<compile_context>
chip_gen: v7x
topology: tpu7x:2x2x1
jax: 0.10.0
libtpu: 0.0.40
codegen_flags: <defaults>
</compile_context>

<pallas_src>
import functools

import jax
import jax.numpy as jnp
from jax.experimental import pallas as pl
from jax.experimental.pallas import tpu as pltpu

LN_EPS = 1e-5
_GELU_C = 0.7978845608028654  # sqrt(2/pi)


def _bert_lm_head_kernel(x_ref, w_ref, b_ref, g_ref, beta_ref, o_ref,
                         acc_ref, row_ref, *, nj, tn):
    """One grid step: (row tile i, vocab tile j, reduction tile k).

    x_ref:    (tm, tk)        input rows (native dtype)
    w_ref:    (tn, tk)        weight tile, torch [V, H] layout
    b_ref:    (1, tn)         dense bias tile
    g_ref:    (1, V)          layernorm gamma (resident)
    beta_ref: (1, V)          layernorm beta  (resident)
    o_ref:    (tm, V)         output rows (resident across j, k)
    acc_ref:  (tm, tn) f32    matmul accumulator scratch
    row_ref:  (nj, tm, tn) f32 post-GELU row scratch (LN is over V)
    """
    j = pl.program_id(1)
    k = pl.program_id(2)
    nk = pl.num_programs(2)
    tm = acc_ref.shape[0]

    @pl.when(k == 0)
    def _init():
        acc_ref[...] = jnp.zeros_like(acc_ref)

    # MXU: contract x's H (last dim) with w's H (last dim) -> (tm, tn), f32 accumulate.
    acc_ref[...] += jax.lax.dot_general(
        x_ref[...], w_ref[...],
        dimension_numbers=(((1,), (1,)), ((), ())),
        preferred_element_type=jnp.float32)

    last_k = k == nk - 1

    @pl.when(last_k)
    def _bias_gelu():
        y = acc_ref[...] + b_ref[...].astype(jnp.float32)
        y = 0.5 * y * (1.0 + jnp.tanh(_GELU_C * (y + 0.044715 * y * y * y)))
        row_ref[j] = y  # park this vocab tile until the full row is available

    @pl.when(jnp.logical_and(last_k, j == nj - 1))
    def _layernorm():
        inv_v = 1.0 / float(nj * tn)
        # Pass 1: mean over the full vocab row (static unroll over vocab tiles).
        s = jnp.zeros((tm, 1), jnp.float32)
        for jj in range(nj):
            s = s + jnp.sum(row_ref[jj], axis=-1, keepdims=True)
        mu = s * inv_v
        # Pass 2: variance.
        ss = jnp.zeros((tm, 1), jnp.float32)
        for jj in range(nj):
            d = row_ref[jj] - mu
            ss = ss + jnp.sum(d * d, axis=-1, keepdims=True)
        rstd = jax.lax.rsqrt(ss * inv_v + LN_EPS)
        # Pass 3: normalize + affine, write lane-dense static slices of the output row.
        g = g_ref[...].astype(jnp.float32)
        beta = beta_ref[...].astype(jnp.float32)
        for jj in range(nj):
            sl = slice(jj * tn, (jj + 1) * tn)
            out = (row_ref[jj] - mu) * rstd * g[:, sl] + beta[:, sl]
            o_ref[:, sl] = out.astype(o_ref.dtype)


def _pick_tile(total, target, align):
    """Largest divisor of `total` that is <= target and a multiple of `align`.
    Falls back to the full extent if no aligned divisor exists."""
    t = min(target, total)
    for cand in range(t, 0, -1):
        if total % cand == 0 and (cand % align == 0 or cand == total):
            return cand
    return total


@jax.jit
def bert_lm_head(hidden_states, dense_w, dense_b, ln_gamma, ln_beta):
    """hidden_states: [B, S, H]; dense_w: [V, H] (torch layout); returns [B, S, V]."""
    B, S, H = hidden_states.shape
    V = dense_w.shape[0]
    N = B * S

    # Tile selection (MXU/lane aligned where divisibility allows).
    tm = min(256, -(-N // 8) * 8)     # row tile: multiple of 8, up to 256
    tn = _pick_tile(V, 512, 128)      # vocab tile: multiple of 128 (or full V)
    tk = _pick_tile(H, 512, 128)      # reduction tile over hidden (or full H)
    nj = V // tn

    Np = -(-N // tm) * tm             # pad rows so the grid divides evenly
    x2d = hidden_states.reshape(N, H)
    if Np != N:
        x2d = jnp.pad(x2d, ((0, Np - N), (0, 0)))

    b2d = dense_b.reshape(1, V)
    g2d = ln_gamma.reshape(1, V)
    be2d = ln_beta.reshape(1, V)

    out_dtype = hidden_states.dtype
    in_bytes = jnp.dtype(hidden_states.dtype).itemsize
    # Rough VMEM footprint: double-buffered inputs + resident output + scratches.
    est = (2 * (tm * tk + tn * tk + tn + 2 * V) * in_bytes
           + 2 * tm * V * jnp.dtype(out_dtype).itemsize
           + 4 * (tm * tn + nj * tm * tn))
    vmem_limit = int(min(max(4 * est, 32 * 2 ** 20), 56 * 2 ** 20))  # < v7x 64 MiB

    kernel = functools.partial(_bert_lm_head_kernel, nj=nj, tn=tn)

    out2d = pl.pallas_call(
        kernel,
        out_shape=jax.ShapeDtypeStruct((Np, V), out_dtype),
        grid_spec=pltpu.PrefetchScalarGridSpec(
            num_scalar_prefetch=0,
            grid=(Np // tm, nj, H // tk),
            in_specs=[
                pl.BlockSpec((tm, tk), lambda i, j, k: (i, k)),   # x rows
                pl.BlockSpec((tn, tk), lambda i, j, k: (j, k)),   # streamed weight tile
                pl.BlockSpec((1, tn), lambda i, j, k: (0, j)),    # bias tile
                pl.BlockSpec((1, V), lambda i, j, k: (0, 0)),     # gamma (resident)
                pl.BlockSpec((1, V), lambda i, j, k: (0, 0)),     # beta  (resident)
            ],
            out_specs=pl.BlockSpec((tm, V), lambda i, j, k: (i, 0)),
            scratch_shapes=[
                pltpu.VMEM((tm, tn), jnp.float32),        # matmul accumulator
                pltpu.VMEM((nj, tm, tn), jnp.float32),    # post-GELU row (LN over V)
            ],
        ),
        compiler_params=pltpu.CompilerParams(
            # rows independent -> parallel; vocab + reduction carried -> arbitrary.
            dimension_semantics=("parallel", "arbitrary", "arbitrary"),
            vmem_limit_bytes=vmem_limit,
        ),
    )(x2d, dense_w, b2d, g2d, be2d)

    return out2d[:N].reshape(B, S, V)


def _reference(hidden_states, dense_w, dense_b, ln_gamma, ln_beta):
    y = jnp.einsum("bsh,vh->bsv", hidden_states, dense_w) + dense_b
    y = 0.5 * y * (1.0 + jnp.tanh(_GELU_C * (y + 0.044715 * y ** 3)))
    mu = jnp.mean(y, axis=-1, keepdims=True)
    var = jnp.mean((y - mu) ** 2, axis=-1, keepdims=True)
    yhat = (y - mu) / jnp.sqrt(var + LN_EPS)
    return yhat * ln_gamma + ln_beta


if __name__ == "__main__":
    # Small synthetic config: hidden_size=32, mpu_vocab_size=128, batch=2, seq=8.
    B, S, H, V = 2, 8, 32, 128
    key = jax.random.PRNGKey(0)
    k_x, k_w, k_b, k_g, k_be = jax.random.split(key, 5)

    hidden_states = jax.random.normal(k_x, (B, S, H), dtype=jnp.float32)
    # Deterministic parameter init (synthetic, not a checkpoint load).
    dense_w = 0.02 * jax.random.normal(k_w, (V, H), dtype=jnp.float32)   # torch layout [out, in]
    dense_b = 0.01 * jax.random.normal(k_b, (V,), dtype=jnp.float32)
    ln_gamma = jnp.ones((V,), dtype=jnp.float32) + 0.05 * jax.random.normal(k_g, (V,), dtype=jnp.float32)
    ln_beta = 0.05 * jax.random.normal(k_be, (V,), dtype=jnp.float32)

    out = bert_lm_head(hidden_states, dense_w, dense_b, ln_gamma, ln_beta)
    out = jax.block_until_ready(out)

    ref = _reference(hidden_states, dense_w, dense_b, ln_gamma, ln_beta)
    assert out.shape == (B, S, V)
    assert jnp.allclose(out, ref, rtol=2e-3, atol=2e-3), "mismatch vs reference"

    print("KERNEL_OK")
</pallas_src>

<mosaic_0001>
module attributes {stable_mosaic.version = 11 : i64} {
  func.func @_bert_lm_head_kernel(%arg0: i32, %arg1: i32, %arg2: i32, %arg3: memref<16x32xf32, #tpu.memory_space<vmem>>, %arg4: memref<128x32xf32, #tpu.memory_space<vmem>>, %arg5: memref<1x128xf32, #tpu.memory_space<vmem>>, %arg6: memref<1x128xf32, #tpu.memory_space<vmem>>, %arg7: memref<1x128xf32, #tpu.memory_space<vmem>>, %arg8: memref<16x128xf32, #tpu.memory_space<vmem>>, %arg9: memref<16x128xf32, #tpu.memory_space<vmem>>, %arg10: memref<1x16x128xf32, #tpu.memory_space<vmem>>) attributes {dimension_semantics = [#tpu.dimension_semantics<parallel>, #tpu.dimension_semantics<arbitrary>, #tpu.dimension_semantics<arbitrary>], iteration_bounds = array<i64: 1, 1, 1>, scalar_prefetch = 0 : i64, scratch_operands = 2 : i64, tpu.core_type = #tpu.core_type<tc>, window_params = [{transform_indices = @transform_0, window_bounds = array<i64: 16, 32>}, {transform_indices = @transform_1, window_bounds = array<i64: 128, 32>}, {transform_indices = @transform_2, window_bounds = array<i64: 1, 128>}, {pipeline_mode = #tpu.pipeline_mode<synchronous>, transform_indices = @transform_3, window_bounds = array<i64: 1, 128>}, {pipeline_mode = #tpu.pipeline_mode<synchronous>, transform_indices = @transform_4, window_bounds = array<i64: 1, 128>}, {transform_indices = @transform_5, window_bounds = array<i64: 16, 128>}]} {
    %c0_i32 = arith.constant 0 : i32
    %0 = arith.cmpi eq, %arg2, %c0_i32 : i32
    %1 = arith.extui %0 : i1 to i32
    %c0_i32_0 = arith.constant 0 : i32
    %2 = arith.cmpi ne, %1, %c0_i32_0 : i32
    scf.if %2 {
      %cst_12 = arith.constant 0.000000e+00 : f32
      %16 = vector.broadcast %cst_12 : f32 to vector<16x128xf32>
      %c0_13 = arith.constant 0 : index
      %c0_14 = arith.constant 0 : index
      %17 = vector.load %arg9[%c0_13, %c0_14] : memref<16x128xf32, #tpu.memory_space<vmem>>, vector<16x128xf32>
      tpu.vector_store %arg9[%c0_13, %c0_14], %16 {strides = array<i32>} : memref<16x128xf32, #tpu.memory_space<vmem>>, vector<16x128xf32>,
    } else {
    }
    %c0 = arith.constant 0 : index
    %c0_1 = arith.constant 0 : index
    %3 = vector.load %arg9[%c0, %c0_1] : memref<16x128xf32, #tpu.memory_space<vmem>>, vector<16x128xf32>
    %c0_2 = arith.constant 0 : index
    %c0_3 = arith.constant 0 : index
    %4 = vector.load %arg3[%c0_2, %c0_3] : memref<16x32xf32, #tpu.memory_space<vmem>>, vector<16x32xf32>
    %c0_4 = arith.constant 0 : index
    %c0_5 = arith.constant 0 : index
    %5 = vector.load %arg4[%c0_4, %c0_5] : memref<128x32xf32, #tpu.memory_space<vmem>>, vector<128x32xf32>
    %cst = arith.constant dense<0.000000e+00> : vector<16x128xf32>
    %6 = tpu.matmul %4, %5, %cst {dimension_numbers = #tpu.dot_dimension_numbers<[1], [1], [0], [0], [0, 0, 1, 0], [], []>} : vector<16x32xf32>, vector<128x32xf32>, vector<16x128xf32> -> vector<16x128xf32>
    %7 = arith.addf %3, %6 : vector<16x128xf32>
    %c0_6 = arith.constant 0 : index
    %c0_7 = arith.constant 0 : index
    %8 = vector.load %arg9[%c0_6, %c0_7] : memref<16x128xf32, #tpu.memory_space<vmem>>, vector<16x128xf32>
    tpu.vector_store %arg9[%c0_6, %c0_7], %7 {strides = array<i32>} : memref<16x128xf32, #tpu.memory_space<vmem>>, vector<16x128xf32>,
    %c0_i32_8 = arith.constant 0 : i32
    %9 = arith.cmpi eq, %arg2, %c0_i32_8 : i32
    %10 = arith.extui %9 : i1 to i32
    %c0_i32_9 = arith.constant 0 : i32
    %11 = arith.cmpi ne, %10, %c0_i32_9 : i32
    scf.if %11 {
      %c0_12 = arith.constant 0 : index
      %c0_13 = arith.constant 0 : index
      %16 = vector.load %arg9[%c0_12, %c0_13] : memref<16x128xf32, #tpu.memory_space<vmem>>, vector<16x128xf32>
      %c0_14 = arith.constant 0 : index
      %c0_15 = arith.constant 0 : index
      %17 = vector.load %arg5[%c0_14, %c0_15] : memref<1x128xf32, #tpu.memory_space<vmem>>, vector<1x128xf32>
      %18 = vector.broadcast %17 : vector<1x128xf32> to vector<16x128xf32>
      %19 = arith.addf %16, %18 : vector<16x128xf32>
      %cst_16 = arith.constant 5.000000e-01 : f32
      %20 = vector.broadcast %cst_16 : f32 to vector<16x128xf32>
      %21 = arith.mulf %20, %19 : vector<16x128xf32>
      %cst_17 = arith.constant 4.471500e-02 : f32
      %22 = vector.broadcast %cst_17 : f32 to vector<16x128xf32>
      %23 = arith.mulf %22, %19 : vector<16x128xf32>
      %24 = arith.mulf %23, %19 : vector<16x128xf32>
      %25 = arith.mulf %24, %19 : vector<16x128xf32>
      %26 = arith.addf %19, %25 : vector<16x128xf32>
      %cst_18 = arith.constant 0.797884583 : f32
      %27 = vector.broadcast %cst_18 : f32 to vector<16x128xf32>
      %28 = arith.mulf %27, %26 : vector<16x128xf32>
      %29 = math.tanh %28 : vector<16x128xf32>
      %cst_19 = arith.constant 1.000000e+00 : f32
      %30 = vector.broadcast %cst_19 : f32 to vector<16x128xf32>
      %31 = arith.addf %30, %29 : vector<16x128xf32>
      %32 = arith.mulf %21, %31 : vector<16x128xf32>
      %33 = arith.index_cast %arg1 : i32 to index
      %c0_20 = arith.constant 0 : index
      %c0_21 = arith.constant 0 : index
      %34 = vector.load %arg10[%33, %c0_20, %c0_21] : memref<1x16x128xf32, #tpu.memory_space<vmem>>, vector<1x16x128xf32>
      %35 = vector.shape_cast %34 : vector<1x16x128xf32> to vector<16x128xf32>
      %36 = vector.shape_cast %32 : vector<16x128xf32> to vector<1x16x128xf32>
      tpu.vector_store %arg10[%33, %c0_20, %c0_21], %36 {strides = array<i32>} : memref<1x16x128xf32, #tpu.memory_space<vmem>>, vector<1x16x128xf32>,
    } else {
    }
    %c0_i32_10 = arith.constant 0 : i32
    %12 = arith.cmpi eq, %arg1, %c0_i32_10 : i32
    %13 = arith.andi %9, %12 : i1
    %14 = arith.extui %13 : i1 to i32
    %c0_i32_11 = arith.constant 0 : i32
    %15 = arith.cmpi ne, %14, %c0_i32_11 : i32
    scf.if %15 {
      %cst_12 = arith.constant 0.000000e+00 : f32
      %16 = vector.broadcast %cst_12 : f32 to vector<16x1xf32>
      %c0_13 = arith.constant 0 : index
      %c0_14 = arith.constant 0 : index
      %c0_15 = arith.constant 0 : index
      %17 = vector.load %arg10[%c0_13, %c0_14, %c0_15] : memref<1x16x128xf32, #tpu.memory_space<vmem>>, vector<1x16x128xf32>
      %18 = vector.shape_cast %17 : vector<1x16x128xf32> to vector<16x128xf32>
      %cst_16 = arith.constant dense<0.000000e+00> : vector<16xf32>
      %19 = vector.multi_reduction <add>, %18, %cst_16 [1] : vector<16x128xf32> to vector<16xf32>
      %20 = vector.shape_cast %19 : vector<16xf32> to vector<16x1xf32>
      %21 = arith.addf %16, %20 : vector<16x1xf32>
      %cst_17 = arith.constant 7.812500e-03 : f32
      %22 = vector.broadcast %cst_17 : f32 to vector<16x1xf32>
      %23 = arith.mulf %21, %22 : vector<16x1xf32>
      %cst_18 = arith.constant 0.000000e+00 : f32
      %24 = vector.broadcast %cst_18 : f32 to vector<16x1xf32>
      %c0_19 = arith.constant 0 : index
      %c0_20 = arith.constant 0 : index
      %c0_21 = arith.constant 0 : index
      %25 = vector.load %arg10[%c0_19, %c0_20, %c0_21] : memref<1x16x128xf32, #tpu.memory_space<vmem>>, vector<1x16x128xf32>
      %26 = vector.shape_cast %25 : vector<1x16x128xf32> to vector<16x128xf32>
      %27 = vector.broadcast %23 : vector<16x1xf32> to vector<16x128xf32>
      %28 = arith.subf %26, %27 : vector<16x128xf32>
      %29 = arith.mulf %28, %28 : vector<16x128xf32>
      %cst_22 = arith.constant dense<0.000000e+00> : vector<16xf32>
      %30 = vector.multi_reduction <add>, %29, %cst_22 [1] : vector<16x128xf32> to vector<16xf32>
      %31 = vector.shape_cast %30 : vector<16xf32> to vector<16x1xf32>
      %32 = arith.addf %24, %31 : vector<16x1xf32>
      %cst_23 = arith.constant 7.812500e-03 : f32
      %33 = vector.broadcast %cst_23 : f32 to vector<16x1xf32>
      %34 = arith.mulf %32, %33 : vector<16x1xf32>
      %cst_24 = arith.constant 9.99999974E-6 : f32
      %35 = vector.broadcast %cst_24 : f32 to vector<16x1xf32>
      %36 = arith.addf %34, %35 : vector<16x1xf32>
      %37 = math.rsqrt %36 : vector<16x1xf32>
      %c0_25 = arith.constant 0 : index
      %c0_26 = arith.constant 0 : index
      %38 = vector.load %arg6[%c0_25, %c0_26] : memref<1x128xf32, #tpu.memory_space<vmem>>, vector<1x128xf32>
      %c0_27 = arith.constant 0 : index
      %c0_28 = arith.constant 0 : index
      %39 = vector.load %arg7[%c0_27, %c0_28] : memref<1x128xf32, #tpu.memory_space<vmem>>, vector<1x128xf32>
      %c0_29 = arith.constant 0 : index
      %c0_30 = arith.constant 0 : index
      %c0_31 = arith.constant 0 : index
      %40 = vector.load %arg10[%c0_29, %c0_30, %c0_31] : memref<1x16x128xf32, #tpu.memory_space<vmem>>, vector<1x16x128xf32>
      %41 = vector.shape_cast %40 : vector<1x16x128xf32> to vector<16x128xf32>
      %42 = vector.broadcast %23 : vector<16x1xf32> to vector<16x128xf32>
      %43 = arith.subf %41, %42 : vector<16x128xf32>
      %44 = vector.broadcast %37 : vector<16x1xf32> to vector<16x128xf32>
      %45 = arith.mulf %43, %44 : vector<16x128xf32>
      %46 = vector.broadcast %38 : vector<1x128xf32> to vector<16x128xf32>
      %47 = arith.mulf %45, %46 : vector<16x128xf32>
      %48 = vector.broadcast %39 : vector<1x128xf32> to vector<16x128xf32>
      %49 = arith.addf %47, %48 : vector<16x128xf32>
      %c0_32 = arith.constant 0 : index
      %c0_33 = arith.constant 0 : index
      %50 = vector.load %arg8[%c0_32, %c0_33] : memref<16x128xf32, #tpu.memory_space<vmem>>, vector<16x128xf32>
      tpu.vector_store %arg8[%c0_32, %c0_33], %49 {strides = array<i32>} : memref<16x128xf32, #tpu.memory_space<vmem>>, vector<16x128xf32>,
    } else {
    }
    return
  }
  func.func @transform_0(%arg0: i32, %arg1: i32, %arg2: i32) -> (i32, i32) {
    %c0_i32 = arith.constant 0 : i32
    return %arg0, %arg2 : i32, i32
  }
  func.func @transform_1(%arg0: i32, %arg1: i32, %arg2: i32) -> (i32, i32) {
    %c0_i32 = arith.constant 0 : i32
    return %arg1, %arg2 : i32, i32
  }
  func.func @transform_2(%arg0: i32, %arg1: i32, %arg2: i32) -> (i32, i32) {
    %c0_i32 = arith.constant 0 : i32
    %c0_i32_0 = arith.constant 0 : i32
    return %c0_i32, %arg1 : i32, i32
  }
  func.func @transform_3(%arg0: i32, %arg1: i32, %arg2: i32) -> (i32, i32) {
    %c0_i32 = arith.constant 0 : i32
    %c0_i32_0 = arith.constant 0 : i32
    %c0_i32_1 = arith.constant 0 : i32
    return %c0_i32, %c0_i32_0 : i32, i32
  }
  func.func @transform_4(%arg0: i32, %arg1: i32, %arg2: i32) -> (i32, i32) {
    %c0_i32 = arith.constant 0 : i32
    %c0_i32_0 = arith.constant 0 : i32
    %c0_i32_1 = arith.constant 0 : i32
    return %c0_i32, %c0_i32_0 : i32, i32
  }
  func.func @transform_5(%arg0: i32, %arg1: i32, %arg2: i32) -> (i32, i32) {
    %c0_i32 = arith.constant 0 : i32
    %c0_i32_0 = arith.constant 0 : i32
    return %arg0, %c0_i32 : i32, i32
  }
}

</mosaic_0001>

<bundles_post_ra>
// kernel: bert_lm_head.1
= control target key start
LH: loop header
LB: loop body
LE: loop exit
PB: predicated region body
PF: predicated region fallthrough
CT: control target
= control target key end

     0   :  { %vm47_vm0 = vcmask 261120   ;;  %s591_s0 = inlined_call_operand.vmem [shape: f32[16,32], index: 0, kind: input, shape index: {}]   ;;  %s592_s1 = inlined_call_operand.vmem [shape: f32[128,32], index: 1, kind: input, shape index: {}]   ;;  %s593_s2 = inlined_call_operand.vmem [shape: f32[1,128], index: 2, kind: input, shape index: {}]   ;;  %s594_s3 = inlined_call_operand.vmem [shape: f32[1,128], index: 3, kind: input, shape index: {}]   ;;  %s595_s4 = inlined_call_operand.vmem [shape: f32[1,128], index: 4, kind: input, shape index: {}]   ;;  %s596_s5 = inlined_call_operand.hbm [shape: f32[16,128], index: 5, kind: output, shape index: {}]  }
   0x1   :  { %v31_v0 = vld [vmem:[%s592_s1] sm:$0xff]  ;;  %v32_v1 = vld [vmem:[%s592_s1 + $0x8] sm:$0xff]  ;;  %v33_v2 = vld [vmem:[%s592_s1 + $0x10] sm:$0xff] }
   0x2   :  { %v360_v3 = vpack.c.bf16 %v32_v1, %v31_v0  ;;  %vm487_vm1 = vmpackc.low %vm47_vm0, %vm47_vm0  ;;  %v34_v5 = vld [vmem:[%s592_s1 + $0x18] sm:$0xff]  ;;  %v29_v7 = vld [vmem:[%s591_s0] sm:$0xff] }
   0x3   :  { %v366_v6 = vpack.c.bf16 %v34_v5, %v33_v2  ;;  %v35_v8 = vld [vmem:[%s592_s1 + $0x20] sm:$0xff]  ;;  %v36_v9 = vld [vmem:[%s592_s1 + $0x28] sm:$0xff]  ;;  %357 = vmatprep.mubr.msk.f32.mxu0 %vm47_vm0, %v29_v7 }
   0x4   :  { %362 = vmatprep.subr.msk.bf16.mxu0 %vm487_vm1, %v360_v3 }
   0x5   :  { %365 = vmatpush3.bf16.xpose.msk.msra.mxu0 %vm487_vm1, %v360_v3 }
   0x6   :  { %368 = vmatprep.subr.msk.bf16.mxu0 %vm487_vm1, %v366_v6 }
   0x7   :  { %10 = vsyncpa [#allocation5], 0  ;;  %v372_v10 = vpack.c.bf16 %v36_v9, %v35_v8  ;;  %v37_v11 = vld [vmem:[%s592_s1 + $0x30] sm:$0xff]  ;;  %v38_v12 = vld [vmem:[%s592_s1 + $0x38] sm:$0xff]  ;;  %s443_s7 = smov [#allocation4]  }
   0x8   :  { %v378_v13 = vpack.c.bf16 %v38_v12, %v37_v11  ;;  %v39_v14 = vld [vmem:[%s592_s1 + $0x40] sm:$0xff]  ;;  %v40_v15 = vld [vmem:[%s592_s1 + $0x48] sm:$0xff]  ;;  %v41_v17 = vld [vmem:[%s592_s1 + $0x50] sm:$0xff]  ;;  %s275_s8 = sshll.u32 %s443_s7, 4  ;;  %s276_s8 = int_to_ptr.vmem [resolvable:$true] %s275_s8 }
   0x9   :  { %v384_v16 = vpack.c.bf16 %v40_v15, %v39_v14  ;;  %v42_v18 = vld [vmem:[%s592_s1 + $0x58] sm:$0xff]  ;;  %v43_v20 = vld [vmem:[%s592_s1 + $0x60] sm:$0xff]  ;;  %v44_v21 = vld [vmem:[%s592_s1 + $0x68] sm:$0xff]  ;;  %s419_s9 = scalar_lea.vmem %s276_s8, 256  ;;  %p424_p1 = scmp.lt.s32.totalorder %s276_s8, %s276_s8 }
   0xa   :  { %v390_v19 = vpack.c.bf16 %v42_v18, %v41_v17  ;;  %v396_v22 = vpack.c.bf16 %v44_v21, %v43_v20  ;;  %v45_v23 = vld [vmem:[%s592_s1 + $0x70] sm:$0xff]  ;;  %v46_v24 = vld [vmem:[%s592_s1 + $0x78] sm:$0xff]  ;;  %v30_v26 = vld [vmem:[%s591_s0 + $0x8] sm:$0xff]  ;;  %p420_p0 = scmp.ne.s32.totalorder %s276_s8, %s419_s9  ;;  %p425_p2 = scmp.lt.s32.totalorder %s419_s9, %s419_s9 }
   0xb   :  { %v402_v25 = vpack.c.bf16 %v46_v24, %v45_v23  ;;  %v304_v27 = vld [vmem:[%s593_s2] ss:$0 sm:$0xff] }
   0xc   :  { %v305_v1 = vld [vmem:[%s594_s3] ss:$0 sm:$0xff]  ;;  %p426_p3 = por %p425_p2, %p424_p1 }
   0xd   :  { %371 = vmatpush3.bf16.xpose.msk.msra.mxu0 %vm487_vm1, %v366_v6  ;;  %v306_v3 = vld [vmem:[%s595_s4] ss:$0 sm:$0xff] }
   0xe   :  { %374 = vmatprep.subr.msk.bf16.mxu0 %vm487_vm1, %v372_v10  ;;  %p427_p4 = pnand %p426_p3, %p420_p0 }
  0x15   :  { %377 = vmatpush3.bf16.xpose.msk.msra.mxu0 %vm487_vm1, %v372_v10 }
  0x16   :  { %380 = vmatprep.subr.msk.bf16.mxu0 %vm487_vm1, %v378_v13 }
  0x1d   :  { %383 = vmatpush3.bf16.xpose.msk.msra.mxu0 %vm487_vm1, %v378_v13 }
  0x1e   :  { %386 = vmatprep.subr.msk.bf16.mxu0 %vm487_vm1, %v384_v16 }
  0x25   :  { %389 = vmatpush3.bf16.xpose.msk.msra.mxu0 %vm487_vm1, %v384_v16 }
  0x26   :  { %392 = vmatprep.subr.msk.bf16.mxu0 %vm487_vm1, %v390_v19 }
  0x2d   :  { %395 = vmatpush3.bf16.xpose.msk.msra.mxu0 %vm487_vm1, %v390_v19 }
  0x2e   :  { %398 = vmatprep.subr.msk.bf16.mxu0 %vm487_vm1, %v396_v22 }
  0x35   :  { %401 = vmatpush3.bf16.xpose.msk.msra.mxu0 %vm487_vm1, %v396_v22 }
  0x36   :  { %404 = vmatprep.subr.msk.bf16.mxu0 %vm487_vm1, %v402_v25 }
  0x3d   :  { %407 = vmatpush3.bf16.xpose.msk.msra.mxu0 %vm487_vm1, %v402_v25 }
  0x44   :  { %358 = vmatmul.mubr.msk.f32.vlgmr.msra.gmra.mrb[0].mxu0 %vm47_vm0, %v30_v26 }
 0x117   :  { %v359_v28 = vpop.f32.mrb[0].mxu0 }
 0x118   :  { %v194_v29 = vadd.f32 %v359_v28, %v304_v27  ;;  %v168_v30 = vpop.f32.mrb[1].mxu0 }
 0x119   :  { %v193_v31 = vadd.f32 %v304_v27, %v168_v30 }
 0x11a   :  { %v198_v32 = vmul.f32 0.044715, %v194_v29  ;;  %v196_v48 = vmul.f32 0.5, %v194_v29 }
 0x11b   :  { %v197_v33 = vmul.f32 0.044715, %v193_v31  ;;  %v195_v44 = vmul.f32 0.5, %v193_v31 }
 0x11c   :  { %v200_v34 = vmul.f32 %v198_v32, %v194_v29 }
 0x11d   :  { %v199_v35 = vmul.f32 %v197_v33, %v193_v31 }
 0x11e   :  { %v202_v36 = vmul.f32 %v200_v34, %v194_v29 }
 0x11f   :  { %v201_v37 = vmul.f32 %v199_v35, %v193_v31 }
 0x120   :  { %v204_v38 = vadd.f32 %v202_v36, %v194_v29 }
 0x121   :  { %v203_v39 = vadd.f32 %v201_v37, %v193_v31 }
 0x122   :  { %v206_v40 = vmul.f32 0.7978846, %v204_v38 }
 0x123   :  { %v205_v41 = vmul.f32 0.7978846, %v203_v39 }
 0x124   :  { %411 = vtanh.f32 %v206_v40 }
 0x125   :  { %413 = vtanh.f32 %v205_v41 }
 0x12e   :  { %v412_v42 = vpop.eup %411 }
 0x12f   :  { %v414_v43 = vpop.eup %413  ;;  %v210_v47 = vadd.f32 1.0, %v412_v42 }
 0x130   :  { %v209_v45 = vadd.f32 1.0, %v414_v43 }
 0x131   :  { %v212_v49 = vmul.f32 %v210_v47, %v196_v48 }
 0x132   :  { %v211_v46 = vmul.f32 %v209_v45, %v195_v44 }
 0x134   :  { %224 = vadd.xlane.f32.xlu0 %v211_v46 }
 0x138   :  { %226 = vadd.xlane.f32.xlu0 %v212_v49 }
 0x1c1   :  { %v225_v50 = vpop.xlane.xlu0 %224 }
 0x1c2   :  { %v230_v51 = vmul.f32 0.0078125, %v225_v50 }
 0x1c4   :  { %v232_v52 = vsub.f32 %v211_v46, %v230_v51 }
 0x1c5   :  { %v227_v53 = vpop.xlane.xlu0 %226 }
 0x1c6   :  { %v231_v54 = vmul.f32 0.0078125, %v227_v53  ;;  %v234_v55 = vmul.f32 %v232_v52, %v232_v52 }
 0x1c8   :  { %v233_v56 = vsub.f32 %v212_v49, %v231_v54  ;;  %236 = vadd.xlane.f32.xlu1 %v234_v55 }
 0x1ca   :  { %v235_v57 = vmul.f32 %v233_v56, %v233_v56 }
 0x1cc   :  { %238 = vadd.xlane.f32.xlu1 %v235_v57 }
 0x255   :  { %v237_v58 = vpop.xlane.xlu1 %236 }
 0x256   :  { %v242_v59 = vmul.f32 0.0078125, %v237_v58 }
 0x258   :  { %v244_v60 = vadd.f32 1e-05, %v242_v59 }
 0x259   :  { %v239_v61 = vpop.xlane.xlu1 %238 }
 0x25a   :  { %415 = vrsqrt.f32 %v244_v60  ;;  %v243_v62 = vmul.f32 0.0078125, %v239_v61 }
 0x25c   :  { %v245_v63 = vadd.f32 1e-05, %v243_v62 }
 0x25e   :  { %417 = vrsqrt.f32 %v245_v63 }
 0x264   :  { %v416_v0 = vpop.eup %415 }
 0x265   :  { %v250_v2 = vmul.f32 %v416_v0, %v232_v52 }
 0x267   :  { %v258_v4 = vmul.f32 %v305_v1, %v250_v2 }
 0x268   :  { %v418_v5 = vpop.eup %417 }
 0x269   :  { %v251_v6 = vmul.f32 %v418_v5, %v233_v56  ;;  %v266_v7 = vadd.f32 %v306_v3, %v258_v4 }
 0x26b   :  { %v259_v8 = vmul.f32 %v305_v1, %v251_v6  ;;  %268 = vst [vmem:[#allocation4] sm:$0xff] %v266_v7 }
 0x26d   :  { %v267_v9 = vadd.f32 %v306_v3, %v259_v8 }
 0x26f   :  { %269 = vst [vmem:[#allocation4 + $0x8] sm:$0xff] %v267_v9 }
 0x270   :  { %430 = shalt.err (!%p427_p4)
}
 0x271   :  { %s431_s10 = scalar_lea.hbm %s596_s5, 256 }
 0x272   :  { %p432_p5 = scmp.ne.s32.totalorder %s596_s5, %s431_s10  ;;  %p435_p6 = scmp.lt.u32.totalorder %s431_s10, %s596_s5 }
 0x274   :  { %p437_p7 = pnand %p435_p6, %p432_p5 }
 0x276   :  { %440 = shalt.err (!%p437_p7)
}
 0x277   :  { %s444_s15 = smov 128   ;;  %s445_s16 = smov 8  }
 0x278   :  { %281 = dma.vmem_to_hbm [thread:$0]  %s276_s8, 256, %s596_s5, [#allocation5], %s444_s15, %s444_s15, %s445_s16  }
 0x279   :  { %441 = dma.done.wait [#allocation5], 256  }
 0x27a   :  { %442 = vsyncadd [#allocation5], 4294967040 }
 0x27b   :  { %285 = vsyncpa [#allocation5], 1 }

</bundles_post_ra>
